<compile_context>
chip_gen: v7x
topology: tpu7x:2x2x1
jax: 0.10.0
libtpu: 0.0.40
codegen_flags: <defaults>
</compile_context>

<pallas_src>
import math

import numpy as np
import jax
import jax.numpy as jnp
from jax.experimental import pallas as pl
from jax.experimental.pallas import tpu as pltpu

INV_SQRT2 = 1.0 / math.sqrt(2.0)
BN_EPS = 1e-5
VMEM_TILE_BUDGET = 10 * 1024 * 1024   # per-step working-set target (safe on v5e/v6e/v7x)


# ----------------------------------------------------------------------------
# Fused conv (+ affine + optional residual + activation) Pallas kernel
# ----------------------------------------------------------------------------
def _make_conv_kernel(KH, KW, tile_H, Wo, Cin, Cout, *, has_res, act):
    M = tile_H * Wo

    def kernel(*refs):
        if has_res:
            x_ref, w_ref, sc_ref, sh_ref, res_ref, mult_ref, o_ref = refs
        else:
            x_ref, w_ref, sc_ref, sh_ref, o_ref = refs

        # x_ref block: (1, 1, tile_H + KH - 1, Wo + KW - 1, Cin)  (halo'd tile)
        acc = None
        for kh in range(KH):
            for kw in range(KW):
                tap = x_ref[0, 0, pl.ds(kh, tile_H), pl.ds(kw, Wo), :]
                tap = tap.reshape(M, Cin)
                d = jnp.dot(tap, w_ref[kh * KW + kw],
                            preferred_element_type=jnp.float32)
                acc = d if acc is None else acc + d

        y = acc * sc_ref[...] + sh_ref[...]            # folded BN (+ conv bias)
        if has_res:
            r = res_ref[0].reshape(M, Cout).astype(jnp.float32)
            y = y + r * mult_ref[0, 0]                 # residual * (input_scale/sqrt2)
        if act == 'relu':
            y = jnp.maximum(y, 0.0)
        elif act == 'tanh':
            y = jnp.tanh(y)
        o_ref[0] = y.reshape(tile_H, Wo, Cout).astype(o_ref.dtype)

    return kernel


# ----------------------------------------------------------------------------
# Glue: reflect padding / nearest-2x upsample / halo tiling via index gathers
# ----------------------------------------------------------------------------
def _reflect(i, n):
    if i < 0:
        return -i
    if i >= n:
        return 2 * n - 2 - i
    return i


def _src_indices(n_up, pad, upsample):
    """Source indices into the ORIGINAL axis for each padded (and maybe 2x-upsampled)
    coordinate.  Folds PyTorch 'reflect' padding and nearest-2x upsampling."""
    idx = []
    for r in range(n_up + 2 * pad):
        u = _reflect(r - pad, n_up)
        idx.append(u // 2 if upsample else u)
    return np.asarray(idx, np.int32)


def _pick_tile_h(Ho, Wo, KH, KW, Cin, Cout, itemsize):
    """Largest divisor of Ho whose per-step working set fits the VMEM budget."""
    W_pad = Wo + KW - 1
    best = 1
    for t in range(1, Ho + 1):
        if Ho % t != 0:
            continue
        need = (2 * (t + KH - 1) * W_pad * Cin * itemsize   # double-buffered input tile
                + 2 * t * Wo * Cout * itemsize              # double-buffered output tile
                + 2 * t * Wo * Cout * itemsize              # residual tile (worst case)
                + t * Wo * Cout * 4                         # f32 accumulator
                + KH * KW * Cin * Cout * itemsize)          # weights
        if need <= VMEM_TILE_BUDGET:
            best = t
    return best


def conv2d_fused(x, w, *, padding=0, scale=None, shift=None, act=None,
                 residual=None, res_mult=None, upsample=False):
    """Stride-1 conv with 'reflect' padding, fused affine/residual/activation epilogue.

    x: (N, H, W, Cin); w: (KH, KW, Cin, Cout).
    Output = act( conv(x_up_padded, w) * scale + shift [+ residual * res_mult] ).
    If upsample=True the input is nearest-2x upsampled (fused into the gather).
    """
    N, H, W, Cin = x.shape
    KH, KW, wcin, Cout = w.shape
    assert wcin == Cin
    H_up = 2 * H if upsample else H
    W_up = 2 * W if upsample else W
    Ho = H_up + 2 * padding - KH + 1
    Wo = W_up + 2 * padding - KW + 1
    W_pad = Wo + KW - 1

    col_src = _src_indices(W_up, padding, upsample)        # (W_pad,)
    row_src = _src_indices(H_up, padding, upsample)        # (Ho + KH - 1,)

    tile_H = _pick_tile_h(Ho, Wo, KH, KW, Cin, Cout, x.dtype.itemsize)
    n_tiles = Ho // tile_H
    halo = tile_H + KH - 1
    row_tiles = np.stack([row_src[i * tile_H: i * tile_H + halo]
                          for i in range(n_tiles)], axis=0)  # (n_tiles, halo)

    # Columns: reflect pad (+ upsample) in one gather; identity fast path for 1x1.
    if padding == 0 and not upsample:
        xc = x
    else:
        xc = jnp.take(x, jnp.asarray(col_src), axis=2)       # (N, H, W_pad, Cin)
    # Rows: pad + upsample + per-tile halo in one gather.
    if padding == 0 and not upsample and n_tiles == 1:
        xt = xc.reshape(N, 1, halo, W_pad, Cin)
    else:
        xt = jnp.take(xc, jnp.asarray(row_tiles), axis=1)    # (N, n_tiles, halo, W_pad, Cin)

    wt = w.reshape(KH * KW, Cin, Cout)
    f32 = jnp.float32
    sc = (jnp.ones((Cout,), f32) if scale is None else scale.astype(f32)).reshape(1, Cout)
    sh = (jnp.zeros((Cout,), f32) if shift is None else shift.astype(f32)).reshape(1, Cout)

    has_res = residual is not None
    kernel = _make_conv_kernel(KH, KW, tile_H, Wo, Cin, Cout,
                               has_res=has_res, act=act)

    in_specs = [
        pl.BlockSpec((1, 1, halo, W_pad, Cin), lambda n, h: (n, h, 0, 0, 0)),
        pl.BlockSpec((KH * KW, Cin, Cout), lambda n, h: (0, 0, 0)),
        pl.BlockSpec((1, Cout), lambda n, h: (0, 0)),
        pl.BlockSpec((1, Cout), lambda n, h: (0, 0)),
    ]
    inputs = [xt, wt, sc, sh]
    if has_res:
        mult = res_mult if res_mult is not None else 1.0
        in_specs.append(pl.BlockSpec((1, tile_H, Wo, Cout), lambda n, h: (n, h, 0, 0)))
        in_specs.append(pl.BlockSpec((1, 1), lambda n, h: (0, 0)))
        inputs += [residual, jnp.reshape(jnp.asarray(mult), (1, 1)).astype(f32)]

    out = pl.pallas_call(
        kernel,
        out_shape=jax.ShapeDtypeStruct((N, Ho, Wo, Cout), x.dtype),
        grid=(N, n_tiles),
        in_specs=in_specs,
        out_specs=pl.BlockSpec((1, tile_H, Wo, Cout), lambda n, h: (n, h, 0, 0)),
        compiler_params=pltpu.CompilerParams(
            dimension_semantics=("parallel", "parallel"),
            vmem_limit_bytes=32 * 1024 * 1024),
    )(*inputs)
    return out


# ----------------------------------------------------------------------------
# Eval-mode BatchNorm folded to per-channel scale/shift (conv bias folded too)
# ----------------------------------------------------------------------------
def _bn_affine(bn, conv_bias=None):
    scale = bn['gamma'] * jax.lax.rsqrt(bn['var'] + BN_EPS)
    shift = bn['beta'] - bn['mean'] * scale
    if conv_bias is not None:
        shift = shift + conv_bias * scale
    return scale, shift


# ----------------------------------------------------------------------------
# Deterministic parameter initialization (synthetic, no checkpoint)
# ----------------------------------------------------------------------------
class _KeyGen:
    def __init__(self, key):
        self._key = key

    def __call__(self):
        self._key, sub = jax.random.split(self._key)
        return sub


def _init_conv(kg, kh, kw, cin, cout, bias):
    fan_in = kh * kw * cin
    w = jax.random.normal(kg(), (kh, kw, cin, cout), jnp.float32) / math.sqrt(fan_in)
    b = (0.05 * jax.random.normal(kg(), (cout,), jnp.float32)) if bias else None
    return {'w': w, 'b': b}


def _init_bn(kg, c):
    return {'gamma': 1.0 + 0.1 * jax.random.normal(kg(), (c,), jnp.float32),
            'beta': 0.1 * jax.random.normal(kg(), (c,), jnp.float32),
            'mean': 0.1 * jax.random.normal(kg(), (c,), jnp.float32),
            'var': jax.random.uniform(kg(), (c,), jnp.float32, 0.5, 1.5)}


def _init_resblock(kg, cin, cout):
    p = {'conv1': _init_conv(kg, 3, 3, cin, cout, False),   # bias = BIAS = False
         'bn1': _init_bn(kg, cout),
         'conv2': _init_conv(kg, 3, 3, cout, cout, True),
         'bn2': _init_bn(kg, cout),
         'input_scale': jnp.ones((), jnp.float32)}
    if cin != cout:
        p['nin'] = _init_conv(kg, 1, 1, cin, cout, True)     # nin_shortcut
    return p


def init_decoder(key, *, ch, out_ch, ch_mult, num_res_blocks, z_channels):
    kg = _KeyGen(key)
    nres = len(ch_mult)
    block_in = ch * ch_mult[nres - 1]
    params = {
        'stem_conv': _init_conv(kg, 3, 3, z_channels, block_in, False),
        'stem_bn': _init_bn(kg, block_in),
        'mid': [_init_resblock(kg, block_in, block_in),
                _init_resblock(kg, block_in, block_in)],
        'levels': [],
    }
    for i_level in reversed(range(nres)):
        block_out = ch * ch_mult[i_level]
        level = {'blocks': []}
        for _ in range(num_res_blocks):
            level['blocks'].append(_init_resblock(kg, block_in, block_out))
            block_in = block_out
        if i_level != 0:
            level['upsample'] = _init_conv(kg, 3, 3, block_in, block_in, False)
        params['levels'].append(level)
    params['final_conv'] = _init_conv(kg, 7, 7, block_in, out_ch, True)
    return params


# ----------------------------------------------------------------------------
# Forward pass (matches Decoder.forward semantics)
# ----------------------------------------------------------------------------
def resblock_forward(p, x, dtype):
    # conv1 (3x3, no bias) + bn1 + relu  -> one fused kernel
    s1, t1 = _bn_affine(p['bn1'])
    h = conv2d_fused(x, p['conv1']['w'].astype(dtype), padding=1,
                     scale=s1, shift=t1, act='relu')
    # shortcut
    if 'nin' in p:
        res = conv2d_fused(x, p['nin']['w'].astype(dtype), padding=0,
                           shift=p['nin']['b'])
    else:
        res = x
    # conv2 (3x3, bias) + bn2 + residual*input_scale + 1/sqrt(2) + relu -> one kernel
    s2, t2 = _bn_affine(p['bn2'], conv_bias=p['conv2']['b'])
    h = conv2d_fused(h, p['conv2']['w'].astype(dtype), padding=1,
                     scale=s2 * INV_SQRT2, shift=t2 * INV_SQRT2, act='relu',
                     residual=res, res_mult=p['input_scale'] * INV_SQRT2)
    return h


def decoder_forward(params, z, tanh_out=False, compute_dtype=jnp.bfloat16):
    dtype = compute_dtype
    h = z.astype(dtype)
    s, t = _bn_affine(params['stem_bn'])                 # stem conv has no bias
    h = conv2d_fused(h, params['stem_conv']['w'].astype(dtype), padding=1,
                     scale=s, shift=t, act='relu')
    for blk in params['mid']:
        h = resblock_forward(blk, h, dtype)
    for level in params['levels']:
        for blk in level['blocks']:
            h = resblock_forward(blk, h, dtype)
        if 'upsample' in level:
            # nearest-2x upsample fused into the conv's input gather
            h = conv2d_fused(h, level['upsample']['w'].astype(dtype),
                             padding=1, upsample=True)
    out = conv2d_fused(h, params['final_conv']['w'].astype(dtype), padding=3,
                       shift=params['final_conv']['b'],
                       act='tanh' if tanh_out else None)
    return out


# ----------------------------------------------------------------------------
if __name__ == "__main__":
    key = jax.random.PRNGKey(0)
    kp, kz = jax.random.split(key)

    ch, out_ch, z_channels = 8, 3, 4
    ch_mult = (1, 2, 4, 4)
    params = init_decoder(kp, ch=ch, out_ch=out_ch, ch_mult=ch_mult,
                          num_res_blocks=2, z_channels=z_channels)

    # Small latent: (N, Hz, Wz, z_channels) in NHWC (PyTorch would be NCHW).
    N, Hz, Wz = 2, 4, 4
    z = jax.random.normal(kz, (N, Hz, Wz, z_channels), jnp.float32)

    # Sanity 1: fused conv kernel (f32) vs XLA reference conv with reflect padding.
    xt_ = jax.random.normal(jax.random.PRNGKey(1), (2, 8, 8, 4), jnp.float32)
    wt_ = jax.random.normal(jax.random.PRNGKey(2), (3, 3, 4, 8), jnp.float32)
    bt_ = jax.random.normal(jax.random.PRNGKey(3), (8,), jnp.float32)
    got = conv2d_fused(xt_, wt_, padding=1, shift=bt_)
    xp_ = jnp.pad(xt_, ((0, 0), (1, 1), (1, 1), (0, 0)), mode='reflect')
    ref = jax.lax.conv_general_dilated(
        xp_, wt_, (1, 1), 'VALID',
        dimension_numbers=('NHWC', 'HWIO', 'NHWC')) + bt_
    assert jnp.allclose(got, ref, atol=1e-3, rtol=1e-3), "conv kernel mismatch"

    # Sanity 2: upsample-fused conv vs repeat + pad + conv reference.
    got_up = conv2d_fused(xt_, wt_, padding=1, upsample=True)
    xup = jnp.repeat(jnp.repeat(xt_, 2, axis=1), 2, axis=2)
    xup = jnp.pad(xup, ((0, 0), (1, 1), (1, 1), (0, 0)), mode='reflect')
    ref_up = jax.lax.conv_general_dilated(
        xup, wt_, (1, 1), 'VALID',
        dimension_numbers=('NHWC', 'HWIO', 'NHWC'))
    assert jnp.allclose(got_up, ref_up, atol=1e-3, rtol=1e-3), "upsample conv mismatch"

    decode = jax.jit(lambda p, x: decoder_forward(p, x, tanh_out=False))
    out = decode(params, z)
    out = jax.block_until_ready(out)

    # 3 upsample stages (i_level = 3, 2, 1) -> spatial x8
    assert out.shape == (N, Hz * 8, Wz * 8, out_ch), out.shape
    assert bool(jnp.all(jnp.isfinite(out.astype(jnp.float32))))
    print("KERNEL_OK")
</pallas_src>

<mosaic_0001>
module attributes {stable_mosaic.version = 11 : i64} {
  func.func @kernel(%arg0: i32, %arg1: i32, %arg2: memref<1x1x10x10x4xf32, #tpu.memory_space<vmem>>, %arg3: memref<9x4x8xf32, #tpu.memory_space<vmem>>, %arg4: memref<1x8xf32, #tpu.memory_space<vmem>>, %arg5: memref<1x8xf32, #tpu.memory_space<vmem>>, %arg6: memref<1x8x8x8xf32, #tpu.memory_space<vmem>>) attributes {dimension_semantics = [#tpu.dimension_semantics<parallel>, #tpu.dimension_semantics<parallel>], iteration_bounds = array<i64: 2, 1>, scalar_prefetch = 0 : i64, scratch_operands = 0 : i64, tpu.core_type = #tpu.core_type<tc>, window_params = [{transform_indices = @transform_0, window_bounds = array<i64: 1, 1, 10, 10, 4>}, {pipeline_mode = #tpu.pipeline_mode<synchronous>, transform_indices = @transform_1, window_bounds = array<i64: 9, 4, 8>}, {pipeline_mode = #tpu.pipeline_mode<synchronous>, transform_indices = @transform_2, window_bounds = array<i64: 1, 8>}, {pipeline_mode = #tpu.pipeline_mode<synchronous>, transform_indices = @transform_3, window_bounds = array<i64: 1, 8>}, {transform_indices = @transform_4, window_bounds = array<i64: 1, 8, 8, 8>}]} {
    %c0 = arith.constant 0 : index
    %c0_0 = arith.constant 0 : index
    %c0_1 = arith.constant 0 : index
    %c0_2 = arith.constant 0 : index
    %c0_3 = arith.constant 0 : index
    %0 = vector.load %arg2[%c0, %c0_0, %c0_1, %c0_2, %c0_3] : memref<1x1x10x10x4xf32, #tpu.memory_space<vmem>>, vector<1x1x8x8x4xf32>
    %1 = vector.shape_cast %0 : vector<1x1x8x8x4xf32> to vector<8x8x4xf32>
    %2 = vector.shape_cast %1 : vector<8x8x4xf32> to vector<64x4xf32>
    %c0_4 = arith.constant 0 : index
    %c0_5 = arith.constant 0 : index
    %c0_6 = arith.constant 0 : index
    %3 = vector.load %arg3[%c0_4, %c0_5, %c0_6] : memref<9x4x8xf32, #tpu.memory_space<vmem>>, vector<1x4x8xf32>
    %4 = vector.shape_cast %3 : vector<1x4x8xf32> to vector<4x8xf32>
    %cst = arith.constant dense<0.000000e+00> : vector<64x8xf32>
    %5 = tpu.matmul %2, %4, %cst {dimension_numbers = #tpu.dot_dimension_numbers<[1], [0], [0], [1], [0, 0, 1, 1], [], []>} : vector<64x4xf32>, vector<4x8xf32>, vector<64x8xf32> -> vector<64x8xf32>
    %c0_7 = arith.constant 0 : index
    %c0_8 = arith.constant 0 : index
    %c0_9 = arith.constant 0 : index
    %c1 = arith.constant 1 : index
    %c0_10 = arith.constant 0 : index
    %6 = vector.load %arg2[%c0_7, %c0_8, %c0_9, %c1, %c0_10] : memref<1x1x10x10x4xf32, #tpu.memory_space<vmem>>, vector<1x1x8x8x4xf32>
    %7 = vector.shape_cast %6 : vector<1x1x8x8x4xf32> to vector<8x8x4xf32>
    %8 = vector.shape_cast %7 : vector<8x8x4xf32> to vector<64x4xf32>
    %c1_11 = arith.constant 1 : index
    %c0_12 = arith.constant 0 : index
    %c0_13 = arith.constant 0 : index
    %9 = vector.load %arg3[%c1_11, %c0_12, %c0_13] : memref<9x4x8xf32, #tpu.memory_space<vmem>>, vector<1x4x8xf32>
    %10 = vector.shape_cast %9 : vector<1x4x8xf32> to vector<4x8xf32>
    %cst_14 = arith.constant dense<0.000000e+00> : vector<64x8xf32>
    %11 = tpu.matmul %8, %10, %cst_14 {dimension_numbers = #tpu.dot_dimension_numbers<[1], [0], [0], [1], [0, 0, 1, 1], [], []>} : vector<64x4xf32>, vector<4x8xf32>, vector<64x8xf32> -> vector<64x8xf32>
    %12 = arith.addf %5, %11 : vector<64x8xf32>
    %c0_15 = arith.constant 0 : index
    %c0_16 = arith.constant 0 : index
    %c0_17 = arith.constant 0 : index
    %c2 = arith.constant 2 : index
    %c0_18 = arith.constant 0 : index
    %13 = vector.load %arg2[%c0_15, %c0_16, %c0_17, %c2, %c0_18] : memref<1x1x10x10x4xf32, #tpu.memory_space<vmem>>, vector<1x1x8x8x4xf32>
    %14 = vector.shape_cast %13 : vector<1x1x8x8x4xf32> to vector<8x8x4xf32>
    %15 = vector.shape_cast %14 : vector<8x8x4xf32> to vector<64x4xf32>
    %c2_19 = arith.constant 2 : index
    %c0_20 = arith.constant 0 : index
    %c0_21 = arith.constant 0 : index
    %16 = vector.load %arg3[%c2_19, %c0_20, %c0_21] : memref<9x4x8xf32, #tpu.memory_space<vmem>>, vector<1x4x8xf32>
    %17 = vector.shape_cast %16 : vector<1x4x8xf32> to vector<4x8xf32>
    %cst_22 = arith.constant dense<0.000000e+00> : vector<64x8xf32>
    %18 = tpu.matmul %15, %17, %cst_22 {dimension_numbers = #tpu.dot_dimension_numbers<[1], [0], [0], [1], [0, 0, 1, 1], [], []>} : vector<64x4xf32>, vector<4x8xf32>, vector<64x8xf32> -> vector<64x8xf32>
    %19 = arith.addf %12, %18 : vector<64x8xf32>
    %c0_23 = arith.constant 0 : index
    %c0_24 = arith.constant 0 : index
    %c1_25 = arith.constant 1 : index
    %c0_26 = arith.constant 0 : index
    %c0_27 = arith.constant 0 : index
    %20 = vector.load %arg2[%c0_23, %c0_24, %c1_25, %c0_26, %c0_27] : memref<1x1x10x10x4xf32, #tpu.memory_space<vmem>>, vector<1x1x8x8x4xf32>
    %21 = vector.shape_cast %20 : vector<1x1x8x8x4xf32> to vector<8x8x4xf32>
    %22 = vector.shape_cast %21 : vector<8x8x4xf32> to vector<64x4xf32>
    %c3 = arith.constant 3 : index
    %c0_28 = arith.constant 0 : index
    %c0_29 = arith.constant 0 : index
    %23 = vector.load %arg3[%c3, %c0_28, %c0_29] : memref<9x4x8xf32, #tpu.memory_space<vmem>>, vector<1x4x8xf32>
    %24 = vector.shape_cast %23 : vector<1x4x8xf32> to vector<4x8xf32>
    %cst_30 = arith.constant dense<0.000000e+00> : vector<64x8xf32>
    %25 = tpu.matmul %22, %24, %cst_30 {dimension_numbers = #tpu.dot_dimension_numbers<[1], [0], [0], [1], [0, 0, 1, 1], [], []>} : vector<64x4xf32>, vector<4x8xf32>, vector<64x8xf32> -> vector<64x8xf32>
    %26 = arith.addf %19, %25 : vector<64x8xf32>
    %c0_31 = arith.constant 0 : index
    %c0_32 = arith.constant 0 : index
    %c1_33 = arith.constant 1 : index
    %c1_34 = arith.constant 1 : index
    %c0_35 = arith.constant 0 : index
    %27 = vector.load %arg2[%c0_31, %c0_32, %c1_33, %c1_34, %c0_35] : memref<1x1x10x10x4xf32, #tpu.memory_space<vmem>>, vector<1x1x8x8x4xf32>
    %28 = vector.shape_cast %27 : vector<1x1x8x8x4xf32> to vector<8x8x4xf32>
    %29 = vector.shape_cast %28 : vector<8x8x4xf32> to vector<64x4xf32>
    %c4 = arith.constant 4 : index
    %c0_36 = arith.constant 0 : index
    %c0_37 = arith.constant 0 : index
    %30 = vector.load %arg3[%c4, %c0_36, %c0_37] : memref<9x4x8xf32, #tpu.memory_space<vmem>>, vector<1x4x8xf32>
    %31 = vector.shape_cast %30 : vector<1x4x8xf32> to vector<4x8xf32>
    %cst_38 = arith.constant dense<0.000000e+00> : vector<64x8xf32>
    %32 = tpu.matmul %29, %31, %cst_38 {dimension_numbers = #tpu.dot_dimension_numbers<[1], [0], [0], [1], [0, 0, 1, 1], [], []>} : vector<64x4xf32>, vector<4x8xf32>, vector<64x8xf32> -> vector<64x8xf32>
    %33 = arith.addf %26, %32 : vector<64x8xf32>
    %c0_39 = arith.constant 0 : index
    %c0_40 = arith.constant 0 : index
    %c1_41 = arith.constant 1 : index
    %c2_42 = arith.constant 2 : index
    %c0_43 = arith.constant 0 : index
    %34 = vector.load %arg2[%c0_39, %c0_40, %c1_41, %c2_42, %c0_43] : memref<1x1x10x10x4xf32, #tpu.memory_space<vmem>>, vector<1x1x8x8x4xf32>
    %35 = vector.shape_cast %34 : vector<1x1x8x8x4xf32> to vector<8x8x4xf32>
    %36 = vector.shape_cast %35 : vector<8x8x4xf32> to vector<64x4xf32>
    %c5 = arith.constant 5 : index
    %c0_44 = arith.constant 0 : index
    %c0_45 = arith.constant 0 : index
    %37 = vector.load %arg3[%c5, %c0_44, %c0_45] : memref<9x4x8xf32, #tpu.memory_space<vmem>>, vector<1x4x8xf32>
    %38 = vector.shape_cast %37 : vector<1x4x8xf32> to vector<4x8xf32>
    %cst_46 = arith.constant dense<0.000000e+00> : vector<64x8xf32>
    %39 = tpu.matmul %36, %38, %cst_46 {dimension_numbers = #tpu.dot_dimension_numbers<[1], [0], [0], [1], [0, 0, 1, 1], [], []>} : vector<64x4xf32>, vector<4x8xf32>, vector<64x8xf32> -> vector<64x8xf32>
    %40 = arith.addf %33, %39 : vector<64x8xf32>
    %c0_47 = arith.constant 0 : index
    %c0_48 = arith.constant 0 : index
    %c2_49 = arith.constant 2 : index
    %c0_50 = arith.constant 0 : index
    %c0_51 = arith.constant 0 : index
    %41 = vector.load %arg2[%c0_47, %c0_48, %c2_49, %c0_50, %c0_51] : memref<1x1x10x10x4xf32, #tpu.memory_space<vmem>>, vector<1x1x8x8x4xf32>
    %42 = vector.shape_cast %41 : vector<1x1x8x8x4xf32> to vector<8x8x4xf32>
    %43 = vector.shape_cast %42 : vector<8x8x4xf32> to vector<64x4xf32>
    %c6 = arith.constant 6 : index
    %c0_52 = arith.constant 0 : index
    %c0_53 = arith.constant 0 : index
    %44 = vector.load %arg3[%c6, %c0_52, %c0_53] : memref<9x4x8xf32, #tpu.memory_space<vmem>>, vector<1x4x8xf32>
    %45 = vector.shape_cast %44 : vector<1x4x8xf32> to vector<4x8xf32>
    %cst_54 = arith.constant dense<0.000000e+00> : vector<64x8xf32>
    %46 = tpu.matmul %43, %45, %cst_54 {dimension_numbers = #tpu.dot_dimension_numbers<[1], [0], [0], [1], [0, 0, 1, 1], [], []>} : vector<64x4xf32>, vector<4x8xf32>, vector<64x8xf32> -> vector<64x8xf32>
    %47 = arith.addf %40, %46 : vector<64x8xf32>
    %c0_55 = arith.constant 0 : index
    %c0_56 = arith.constant 0 : index
    %c2_57 = arith.constant 2 : index
    %c1_58 = arith.constant 1 : index
    %c0_59 = arith.constant 0 : index
    %48 = vector.load %arg2[%c0_55, %c0_56, %c2_57, %c1_58, %c0_59] : memref<1x1x10x10x4xf32, #tpu.memory_space<vmem>>, vector<1x1x8x8x4xf32>
    %49 = vector.shape_cast %48 : vector<1x1x8x8x4xf32> to vector<8x8x4xf32>
    %50 = vector.shape_cast %49 : vector<8x8x4xf32> to vector<64x4xf32>
    %c7 = arith.constant 7 : index
    %c0_60 = arith.constant 0 : index
    %c0_61 = arith.constant 0 : index
    %51 = vector.load %arg3[%c7, %c0_60, %c0_61] : memref<9x4x8xf32, #tpu.memory_space<vmem>>, vector<1x4x8xf32>
    %52 = vector.shape_cast %51 : vector<1x4x8xf32> to vector<4x8xf32>
    %cst_62 = arith.constant dense<0.000000e+00> : vector<64x8xf32>
    %53 = tpu.matmul %50, %52, %cst_62 {dimension_numbers = #tpu.dot_dimension_numbers<[1], [0], [0], [1], [0, 0, 1, 1], [], []>} : vector<64x4xf32>, vector<4x8xf32>, vector<64x8xf32> -> vector<64x8xf32>
    %54 = arith.addf %47, %53 : vector<64x8xf32>
    %c0_63 = arith.constant 0 : index
    %c0_64 = arith.constant 0 : index
    %c2_65 = arith.constant 2 : index
    %c2_66 = arith.constant 2 : index
    %c0_67 = arith.constant 0 : index
    %55 = vector.load %arg2[%c0_63, %c0_64, %c2_65, %c2_66, %c0_67] : memref<1x1x10x10x4xf32, #tpu.memory_space<vmem>>, vector<1x1x8x8x4xf32>
    %56 = vector.shape_cast %55 : vector<1x1x8x8x4xf32> to vector<8x8x4xf32>
    %57 = vector.shape_cast %56 : vector<8x8x4xf32> to vector<64x4xf32>
    %c8 = arith.constant 8 : index
    %c0_68 = arith.constant 0 : index
    %c0_69 = arith.constant 0 : index
    %58 = vector.load %arg3[%c8, %c0_68, %c0_69] : memref<9x4x8xf32, #tpu.memory_space<vmem>>, vector<1x4x8xf32>
    %59 = vector.shape_cast %58 : vector<1x4x8xf32> to vector<4x8xf32>
    %cst_70 = arith.constant dense<0.000000e+00> : vector<64x8xf32>
    %60 = tpu.matmul %57, %59, %cst_70 {dimension_numbers = #tpu.dot_dimension_numbers<[1], [0], [0], [1], [0, 0, 1, 1], [], []>} : vector<64x4xf32>, vector<4x8xf32>, vector<64x8xf32> -> vector<64x8xf32>
    %61 = arith.addf %54, %60 : vector<64x8xf32>
    %c0_71 = arith.constant 0 : index
    %c0_72 = arith.constant 0 : index
    %62 = vector.load %arg4[%c0_71, %c0_72] : memref<1x8xf32, #tpu.memory_space<vmem>>, vector<1x8xf32>
    %63 = vector.broadcast %62 : vector<1x8xf32> to vector<64x8xf32>
    %64 = arith.mulf %61, %63 : vector<64x8xf32>
    %c0_73 = arith.constant 0 : index
    %c0_74 = arith.constant 0 : index
    %65 = vector.load %arg5[%c0_73, %c0_74] : memref<1x8xf32, #tpu.memory_space<vmem>>, vector<1x8xf32>
    %66 = vector.broadcast %65 : vector<1x8xf32> to vector<64x8xf32>
    %67 = arith.addf %64, %66 : vector<64x8xf32>
    %68 = vector.shape_cast %67 : vector<64x8xf32> to vector<8x8x8xf32>
    %c0_75 = arith.constant 0 : index
    %c0_76 = arith.constant 0 : index
    %c0_77 = arith.constant 0 : index
    %c0_78 = arith.constant 0 : index
    %69 = vector.load %arg6[%c0_75, %c0_76, %c0_77, %c0_78] : memref<1x8x8x8xf32, #tpu.memory_space<vmem>>, vector<1x8x8x8xf32>
    %70 = vector.shape_cast %69 : vector<1x8x8x8xf32> to vector<8x8x8xf32>
    %71 = vector.shape_cast %68 : vector<8x8x8xf32> to vector<1x8x8x8xf32>
    tpu.vector_store %arg6[%c0_75, %c0_76, %c0_77, %c0_78], %71 {strides = array<i32>} : memref<1x8x8x8xf32, #tpu.memory_space<vmem>>, vector<1x8x8x8xf32>,
    return
  }
  func.func @transform_0(%arg0: i32, %arg1: i32) -> (i32, i32, i32, i32, i32) {
    %c0_i32 = arith.constant 0 : i32
    %c0_i32_0 = arith.constant 0 : i32
    %c0_i32_1 = arith.constant 0 : i32
    %c0_i32_2 = arith.constant 0 : i32
    return %arg0, %arg1, %c0_i32, %c0_i32_0, %c0_i32_1 : i32, i32, i32, i32, i32
  }
  func.func @transform_1(%arg0: i32, %arg1: i32) -> (i32, i32, i32) {
    %c0_i32 = arith.constant 0 : i32
    %c0_i32_0 = arith.constant 0 : i32
    %c0_i32_1 = arith.constant 0 : i32
    %c0_i32_2 = arith.constant 0 : i32
    return %c0_i32, %c0_i32_0, %c0_i32_1 : i32, i32, i32
  }
  func.func @transform_2(%arg0: i32, %arg1: i32) -> (i32, i32) {
    %c0_i32 = arith.constant 0 : i32
    %c0_i32_0 = arith.constant 0 : i32
    %c0_i32_1 = arith.constant 0 : i32
    return %c0_i32, %c0_i32_0 : i32, i32
  }
  func.func @transform_3(%arg0: i32, %arg1: i32) -> (i32, i32) {
    %c0_i32 = arith.constant 0 : i32
    %c0_i32_0 = arith.constant 0 : i32
    %c0_i32_1 = arith.constant 0 : i32
    return %c0_i32, %c0_i32_0 : i32, i32
  }
  func.func @transform_4(%arg0: i32, %arg1: i32) -> (i32, i32, i32, i32) {
    %c0_i32 = arith.constant 0 : i32
    %c0_i32_0 = arith.constant 0 : i32
    %c0_i32_1 = arith.constant 0 : i32
    return %arg0, %arg1, %c0_i32, %c0_i32_0 : i32, i32, i32, i32
  }
}

</mosaic_0001>

<bundles_post_ra>
// kernel: tpu_custom_call.1
= control target key start
LH: loop header
LB: loop body
LE: loop exit
PB: predicated region body
PF: predicated region fallthrough
CT: control target
= control target key end

     0   :  { %9 = vsyncpa [#allocation3], 0  ;;  %s2655_s0 = inlined_call_operand.vmem [shape: f32[2,1,10,10,4], index: 0, kind: input, shape index: {}]   ;;  %s2656_s1 = inlined_call_operand.vmem [shape: f32[9,4,8], index: 1, kind: input, shape index: {}]   ;;  %s2657_s2 = inlined_call_operand.vmem [shape: f32[1,8], index: 2, kind: input, shape index: {}]   ;;  %s2658_s3 = inlined_call_operand.vmem [shape: f32[1,8], index: 3, kind: input, shape index: {}]   ;;  %s2659_s4 = inlined_call_operand.hbm [shape: f32[2,8,8,8], index: 4, kind: output, shape index: {}]  }
   0x1   :  { %11 = vsyncpa [#allocation3 + $0x1], 0  ;;  %s2290_s15 = smov 0   ;;  %s2292_s16 = smov 0  }
   0x2   :  { %s2294_s17 = smov 0   ;;  %s2296_s18 = smov 0  }
   0x3   :  { %s2298_s19 = smov 0   ;;  %s2300_s20 = smov 0  }
   0x4 LB: > { %s1699_s21 = sadd.s32 4294967295, %s2260_s20   ;;  %s1700_s22 = sadd.s32 4294967294, %s2260_s20   ;;  %s2260_s20 = sphi %s2300_s20, %s17_s20   ;;  %s2256_s19 = sphi %s2298_s19, %s2666_s19   ;;  %s2252_s18 = sphi %s2296_s18, %s2665_s18   ;;  %s2248_s17 = sphi %s2294_s17, %s2664_s17   ;;  %s2244_s16 = sphi %s2292_s16, %s2663_s16   ;;  %s2240_s15 = sphi %s2290_s15, %s2662_s15  }
   0x5   : > { %s29_s23 = sadd.s32 1, %s2256_s19  ;;  %s129_s24 = sadd.s32 1, %s2248_s17 }
   0x6   : > { %p31_p0 = scmp.ge.s32.totalorder %s29_s23, 2  ;;  %p139_p1 = scmp.ne.s32.totalorder %s2248_s17, %s2244_s16 }
   0x7   : > { %p140_p2 = scmp.eq.s32.totalorder %s1699_s21, 1  ;;  %p145_p3 = scmp.ne.s32.totalorder %s2244_s16, %s2240_s15 }
   0x8   : > { %s2668_s23 = smov (%p31_p0, %s29_s23), 0  ;;  %p146_p5 = scmp.eq.s32.totalorder %s1700_s22, 1 }
   0x9   : > { %p2330_p4 = por %p140_p2, %p139_p1  ;;  %s124_s26 = ssub.s32 %s2256_s19, %s2668_s23 }
   0xa   : > { %p1703_p6 = scmp.ge.s32.totalorder %s2260_s20, 1  ;;  %p127_p7 = scmp.eq.s32.totalorder %s124_s26, 0 }
   0xb   : > { %p2337_p8 = por %p146_p5, %p145_p3  ;;  %p185_p9 = scmp.lt.s32.totalorder %s2260_s20, 3 }
   0xc   : > { %s2343_s28 = scalar_select %p127_p7, %s2248_s17, %s129_s24  }
   0xd   : > { %p186_p10 = pnand %p1703_p6, %p185_p9 }
   0xe   : > { %v1706_v0 = vld [vmem:[%s2656_s1 + $0x4] sm:$0xf] (!%p186_p10)  ;;  %vm269_vm0 = vcmask (!%p186_p10), 1043456   ;;  %v2351_v1 = vld [vmem:[%s2656_s1 + $0x10] sm:$0xf] (!%p186_p10)  ;;  %p215_p11 = scmp.lt.s32.totalorder (!%p186_p10), %s2252_s18, 1 }
   0xf   : > { %189 = sbr.rel (%p186_p10) target bundleno = 331 (0x14b), region = 36  ;;  %1932 = vmatprep.subr.msk.mxu1 (!%p186_p10), %vm269_vm0, %v1706_v0  ;;  %1988 = vmatprep.subr.msk.mxu0 (!%p186_p10), %vm269_vm0, %v2351_v1  ;;  %v233_v2 = vld [vmem:[%s2656_s1] sm:$0xf] (!%p186_p10)  ;;  %v1779_v3 = vld [vmem:[%s2656_s1 + $0x14] sm:$0xf] (!%p186_p10)  ;;  %vm244_vm1 = vcmask (!%p186_p10), 31744  }
  0x10   : > { %1933 = vmatpush3.msk.msra.mxu1 (!%p186_p10), %vm269_vm0, %v1706_v0  ;;  %1989 = vmatpush3.msk.msra.mxu0 (!%p186_p10), %vm269_vm0, %v2351_v1  ;;  %v1797_v8 = vld [vmem:[%s2656_s1 + $0x18] sm:$0xf] (!%p186_p10)  ;;  %v1725_v9 = vld [vmem:[%s2656_s1 + $0x8] sm:$0xf] (!%p186_p10)  ;;  %v1815_v16 = vld [vmem:[%s2656_s1 + $0x1c] sm:$0xf] (!%p186_p10) }
  0x11   : > { %1946 = vmatprep.subr.msk.mxu1 (!%p186_p10), %vm269_vm0, %v233_v2  ;;  %2002 = vmatprep.subr.msk.mxu0 (!%p186_p10), %vm269_vm0, %v1779_v3  ;;  %v1743_v25 = vld [vmem:[%s2656_s1 + $0xc] sm:$0xf] (!%p186_p10)  ;;  %v1833_v31 = vld [vmem:[%s2656_s1 + $0x20] sm:$0xf] (!%p186_p10)  ;;  %s212_s10 = sand.u32 (!%p186_p10), 1, %s2244_s16   ;;  %vm1592_vm2 = vcmask (!%p186_p10), 64512  }
  0x12   : > { %v1843_v44 = vld [vmem:[%s2657_s2] ss:$0 sm:$0xff] (!%p186_p10)  ;;  %s1704_s13 = sshll.u32 (!%p186_p10), %s212_s10, 6  ;;  %s1850_s24 = sshll.u32 (!%p186_p10), %s2252_s18, 10 }
  0x13   : > { %v1844_v47 = vld [vmem:[%s2658_s3] ss:$0 sm:$0xff] (!%p186_p10)  ;;  %s2580_s22 = scalar_lea.vmem (!%p186_p10), [#allocation2], %s1704_s13  ;;  %s2599_s5 = scalar_lea.hbm (!%p186_p10), %s2659_s4, %s1850_s24 }
  0x14   : > { %s1617_s26 = sshll.u32 (!%p186_p10), %s2580_s22, 4  ;;  %s2262_s7 = smov (!%p186_p10), [#allocation2]   ;;  %s2601_s26 = int_to_ptr.vmem [resolvable:$true] %s1617_s26 }
  0x15   : > { %s2182_s6 = scalar_lea.vmem (!%p186_p10), %s2601_s26, 1024  ;;  %s2186_s8 = sshll.u32 (!%p186_p10), %s2262_s7, 4  ;;  %s2187_s8 = int_to_ptr.vmem [resolvable:$false] %s2186_s8 }
  0x16   : > { %s216_s11 = scalar_select %p215_p11, %s2252_s18, 1 }
  0x17   : > { %s2609_s18 = scalar_lea.sflag [#allocation3], %s212_s10  ;;  %p2183_p12 = scmp.ne.s32.totalorder %s2601_s26, %s2182_s6 }
  0x18   : > { %s2124_s12 = smul.u32 160, %s216_s11  ;;  %s2188_s9 = scalar_lea.vmem %s2187_s8, 2048 }
  0x19   : > { %p2184_p13 = pnand %p2183_p12, %p2330_p4  ;;  %p2189_p1 = scmp.lt.s32.totalorder %s2601_s26, %s2187_s8 }
  0x1a   : > { %s2372_s21 = scalar_lea.vmem %s2655_s0, %s2124_s12  ;;  %p2190_p2 = scmp.lt.s32.totalorder %s2188_s9, %s2182_s6 }
  0x1b   : > { %v234_v4 = vld [vmem:[%s2372_s21 + $0x1] sm:$0xff]  ;;  %v1753_v5 = vld [vmem:[%s2372_s21 + $0x11] sm:$0xff]  ;;  %p2185_p0 = pneg %p2184_p13 }
  0x1c   : > { %v2377_v6 = vld [vmem:[%s2372_s21 + $0x21] sm:$0xff]  ;;  %1934 = vmatprep.mubr.msk.f32.mxu1 %vm244_vm1, %v234_v4  ;;  %1990 = vmatprep.mubr.msk.f32.mxu0 %vm244_vm1, %v1753_v5  ;;  %v2382_v7 = vld [vmem:[%s2372_s21 + $0x31] sm:$0xff]  ;;  %p2191_p3 = por %p2190_p2, %p2189_p1 }
  0x1d   : > { %1935 = vmatmul.mubr.msk.f32.vlgmr.msra.gmra.mrb[0].mxu1 %vm244_vm1, %v1753_v5  ;;  %1991 = vmatmul.mubr.msk.f32.vlgmr.msra.gmra.mrb[0].mxu0 %vm244_vm1, %v2377_v6  ;;  %v2396_v10 = vld [vmem:[%s2372_s21 + $0x41] sm:$0xff]  ;;  %v1771_v11 = vld [vmem:[%s2372_s21 + $0x12] sm:$0xff] }
  0x1e   : > { %1947 = vmatpush3.msk.msra.mxu1 %vm269_vm0, %v233_v2  ;;  %2003 = vmatpush3.msk.msra.mxu0 %vm269_vm0, %v1779_v3  ;;  %v2413_v12 = vld [vmem:[%s2372_s21 + $0x51] sm:$0xff]  ;;  %v2416_v13 = vld [vmem:[%s2372_s21 + $0x22] sm:$0xff]  ;;  %p2192_p5 = pnand %p2191_p3, %p2185_p0 }
  0x1f   : > { %1937 = vmatprep.mubr.msk.f32.mxu1 %vm244_vm1, %v2377_v6  ;;  %1993 = vmatprep.mubr.msk.f32.mxu0 %vm244_vm1, %v2382_v7  ;;  %v2419_v14 = vld [vmem:[%s2372_s21 + $0x61] sm:$0xff]  ;;  %v2422_v15 = vld [vmem:[%s2372_s21 + $0x32] sm:$0xff] }
  0x20   : > { %2016 = vmatprep.subr.msk.mxu0 %vm269_vm0, %v1797_v8  ;;  %1960 = vmatprep.subr.msk.mxu1 %vm269_vm0, %v1725_v9  ;;  %v2435_v17 = vld [vmem:[%s2372_s21 + $0x71] sm:$0xff]  ;;  %v2438_v18 = vld [vmem:[%s2372_s21 + $0x42] sm:$0xff] }
  0x21   : > { %1938 = vmatmul.mubr.msk.f32.gmra.mrb[2].mxu1 %vm244_vm1, %v2382_v7  ;;  %1994 = vmatmul.mubr.msk.f32.gmra.mrb[2].mxu0 %vm244_vm1, %v2396_v10  ;;  %v225_v19 = vld [vmem:[%s2372_s21] sm:$0xff]  ;;  %v2444_v20 = vld [vmem:[%s2372_s21 + $0x52] sm:$0xff] }
  0x22   : > { %1940 = vmatprep.mubr.msk.f32.mxu1 %vm244_vm1, %v2396_v10  ;;  %2004 = vmatprep.mubr.msk.f32.mxu0 %vm244_vm1, %v1771_v11  ;;  %v226_v21 = vld [vmem:[%s2372_s21 + $0x10] sm:$0xff]  ;;  %v2456_v22 = vld [vmem:[%s2372_s21 + $0x62] sm:$0xff] }
  0x23   : > { %v227_v23 = vld [vmem:[%s2372_s21 + $0x20] sm:$0xff]  ;;  %v2460_v24 = vld [vmem:[%s2372_s21 + $0x72] sm:$0xff] }
  0x24   : > { %v228_v26 = vld [vmem:[%s2372_s21 + $0x30] sm:$0xff]  ;;  %v2472_v27 = vld [vmem:[%s2372_s21 + $0x82] sm:$0xff] }
  0x25   : > { %1941 = vmatmul.mubr.msk.f32.gmra.mrb[4].mxu1 %vm244_vm1, %v2413_v12  ;;  %2005 = vmatmul.mubr.msk.f32.vlgmr.msra.gmra.mrb[0].mxu0 %vm244_vm1, %v2416_v13  ;;  %v229_v28 = vld [vmem:[%s2372_s21 + $0x40] sm:$0xff]  ;;  %v230_v29 = vld [vmem:[%s2372_s21 + $0x50] sm:$0xff] }
  0x26   : > { %2017 = vmatpush3.msk.msra.mxu0 %vm269_vm0, %v1797_v8  ;;  %1943 = vmatprep.mubr.msk.f32.mxu1 %vm244_vm1, %v2419_v14  ;;  %v231_v30 = vld [vmem:[%s2372_s21 + $0x60] sm:$0xff]  ;;  %v232_v32 = vld [vmem:[%s2372_s21 + $0x70] sm:$0xff] }
  0x27   : > { %2007 = vmatprep.mubr.msk.f32.mxu0 %vm244_vm1, %v2422_v15  ;;  %2030 = vmatprep.subr.msk.mxu0 %vm269_vm0, %v1815_v16  ;;  %v510_v33 = vld [vmem:[%s2372_s21 + $0x2] sm:$0xff]  ;;  %v1796_v35 = vld [vmem:[%s2372_s21 + $0x90] sm:$0xff] }
  0x28   : > { %v1795_v34 = vld [vmem:[%s2372_s21 + $0x80] sm:$0xff]  ;;  %v1814_v37 = vld [vmem:[%s2372_s21 + $0x91] sm:$0xff] }
  0x29   : > { %1944 = vmatmul.mubr.msk.f32.gmra.mrb[6].mxu1 %vm244_vm1, %v2435_v17  ;;  %2008 = vmatmul.mubr.msk.f32.gmra.mrb[2].mxu0 %vm244_vm1, %v2438_v18  ;;  %v1813_v36 = vld [vmem:[%s2372_s21 + $0x81] sm:$0xff]  ;;  %v1832_v38 = vld [vmem:[%s2372_s21 + $0x92] sm:$0xff] }
  0x2a   : > { %1948 = vmatprep.mubr.msk.f32.mxu1 %vm244_vm1, %v225_v19  ;;  %2010 = vmatprep.mubr.msk.f32.mxu0 %vm244_vm1, %v2444_v20 }
  0x2d   : > { %1949 = vmatmul.mubr.msk.f32.vlgmr.msra.gmra.mrb[0].mxu1 %vm244_vm1, %v226_v21  ;;  %2011 = vmatmul.mubr.msk.f32.gmra.mrb[4].mxu0 %vm244_vm1, %v2456_v22 }
  0x2e   : > { %1961 = vmatpush3.msk.msra.mxu1 %vm269_vm0, %v1725_v9  ;;  %1951 = vmatprep.mubr.msk.f32.mxu1 %vm244_vm1, %v227_v23 }
  0x2f   : > { %2013 = vmatprep.mubr.msk.f32.mxu0 %vm244_vm1, %v2460_v24  ;;  %1974 = vmatprep.subr.msk.mxu1 %vm269_vm0, %v1743_v25 }
  0x31   : > { %1952 = vmatmul.mubr.msk.f32.gmra.mrb[2].mxu1 %vm244_vm1, %v228_v26  ;;  %2014 = vmatmul.mubr.msk.f32.gmra.mrb[6].mxu0 %vm244_vm1, %v2472_v27 }
  0x32   : > { %1954 = vmatprep.mubr.msk.f32.mxu1 %vm244_vm1, %v229_v28  ;;  %2018 = vmatprep.mubr.msk.f32.mxu0 %vm244_vm1, %v227_v23 }
  0x35   : > { %1955 = vmatmul.mubr.msk.f32.gmra.mrb[4].mxu1 %vm244_vm1, %v230_v29  ;;  %2019 = vmatmul.mubr.msk.f32.vlgmr.msra.gmra.mrb[0].mxu0 %vm244_vm1, %v228_v26 }
  0x36   : > { %2031 = vmatpush3.msk.msra.mxu0 %vm269_vm0, %v1815_v16  ;;  %1957 = vmatprep.mubr.msk.f32.mxu1 %vm244_vm1, %v231_v30 }
  0x37   : > { %2021 = vmatprep.mubr.msk.f32.mxu0 %vm244_vm1, %v229_v28  ;;  %2044 = vmatprep.subr.msk.mxu0 %vm269_vm0, %v1833_v31 }
  0x39   : > { %1958 = vmatmul.mubr.msk.f32.gmra.mrb[6].mxu1 %vm244_vm1, %v232_v32  ;;  %2022 = vmatmul.mubr.msk.f32.gmra.mrb[2].mxu0 %vm244_vm1, %v230_v29 }
  0x3a   : > { %1962 = vmatprep.mubr.msk.f32.mxu1 %vm244_vm1, %v510_v33  ;;  %2024 = vmatprep.mubr.msk.f32.mxu0 %vm244_vm1, %v231_v30 }
  0x3d   : > { %1963 = vmatmul.mubr.msk.f32.vlgmr.msra.gmra.mrb[0].mxu1 %vm244_vm1, %v1771_v11  ;;  %2025 = vmatmul.mubr.msk.f32.gmra.mrb[4].mxu0 %vm244_vm1, %v232_v32 }
  0x3e   : > { %1975 = vmatpush3.msk.msra.mxu1 %vm269_vm0, %v1743_v25  ;;  %1965 = vmatprep.mubr.msk.f32.mxu1 %vm244_vm1, %v2416_v13 }
  0x3f   : > { %2027 = vmatprep.mubr.msk.f32.mxu0 %vm244_vm1, %v1795_v34  ;;  %2058 = vmatprep.subr.msk.mxu1 %vm269_vm0, %v2351_v1 }
  0x41   : > { %1966 = vmatmul.mubr.msk.f32.gmra.mrb[2].mxu1 %vm244_vm1, %v2422_v15  ;;  %2028 = vmatmul.mubr.msk.f32.gmra.mrb[6].mxu0 %vm244_vm1, %v1796_v35 }
  0x42   : > { %1968 = vmatprep.mubr.msk.f32.mxu1 %vm244_vm1, %v2438_v18  ;;  %2032 = vmatprep.mubr.msk.f32.mxu0 %vm244_vm1, %v2377_v6 }
  0x45   : > { %1969 = vmatmul.mubr.msk.f32.gmra.mrb[4].mxu1 %vm244_vm1, %v2444_v20  ;;  %2033 = vmatmul.mubr.msk.f32.vlgmr.msra.gmra.mrb[0].mxu0 %vm244_vm1, %v2382_v7 }
  0x46   : > { %2045 = vmatpush3.msk.msra.mxu0 %vm269_vm0, %v1833_v31  ;;  %1971 = vmatprep.mubr.msk.f32.mxu1 %vm244_vm1, %v2456_v22 }
  0x47   : > { %2035 = vmatprep.mubr.msk.f32.mxu0 %vm244_vm1, %v2396_v10 }
  0x49   : > { %1972 = vmatmul.mubr.msk.f32.gmra.mrb[6].mxu1 %vm244_vm1, %v2460_v24  ;;  %2036 = vmatmul.mubr.msk.f32.gmra.mrb[2].mxu0 %vm244_vm1, %v2413_v12 }
  0x4a   : > { %1976 = vmatprep.mubr.msk.f32.mxu1 %vm244_vm1, %v226_v21  ;;  %2038 = vmatprep.mubr.msk.f32.mxu0 %vm244_vm1, %v2419_v14 }
  0x4d   : > { %1977 = vmatmul.mubr.msk.f32.vlgmr.msra.gmra.mrb[0].mxu1 %vm244_vm1, %v227_v23  ;;  %2039 = vmatmul.mubr.msk.f32.gmra.mrb[4].mxu0 %vm244_vm1, %v2435_v17 }
  0x4e   : > { %2059 = vmatpush3.msk.msra.mxu1 %vm269_vm0, %v2351_v1  ;;  %1979 = vmatprep.mubr.msk.f32.mxu1 %vm244_vm1, %v228_v26 }
  0x4f   : > { %2041 = vmatprep.mubr.msk.f32.mxu0 %vm244_vm1, %v1813_v36 }
  0x51   : > { %1980 = vmatmul.mubr.msk.f32.gmra.mrb[2].mxu1 %vm244_vm1, %v229_v28  ;;  %2042 = vmatmul.mubr.msk.f32.gmra.mrb[6].mxu0 %vm244_vm1, %v1814_v37 }
  0x52   : > { %1982 = vmatprep.mubr.msk.f32.mxu1 %vm244_vm1, %v230_v29  ;;  %2046 = vmatprep.mubr.msk.f32.mxu0 %vm244_vm1, %v2416_v13 }
  0x55   : > { %1983 = vmatmul.mubr.msk.f32.gmra.mrb[4].mxu1 %vm244_vm1, %v231_v30  ;;  %2047 = vmatmul.mubr.msk.f32.vlgmr.msra.gmra.mrb[0].mxu0 %vm244_vm1, %v2422_v15 }
  0x56   : > { %1985 = vmatprep.mubr.msk.f32.mxu1 %vm244_vm1, %v232_v32  ;;  %2049 = vmatprep.mubr.msk.f32.mxu0 %vm244_vm1, %v2438_v18 }
  0x59   : > { %1986 = vmatmul.mubr.msk.f32.gmra.mrb[6].mxu1 %vm244_vm1, %v1795_v34  ;;  %2050 = vmatmul.mubr.msk.f32.gmra.mrb[2].mxu0 %vm244_vm1, %v2444_v20 }
  0x5a   : > { %1996 = vmatprep.mubr.msk.f32.mxu1 %vm244_vm1, %v2413_v12  ;;  %2052 = vmatprep.mubr.msk.f32.mxu0 %vm244_vm1, %v2456_v22 }
  0x5d   : > { %1997 = vmatmul.mubr.msk.f32.vlgmr.msra.gmra.mrb[4].mxu1 %vm244_vm1, %v2419_v14  ;;  %2053 = vmatmul.mubr.msk.f32.gmra.mrb[4].mxu0 %vm244_vm1, %v2460_v24 }
  0x5e   : > { %1999 = vmatprep.mubr.msk.f32.mxu1 %vm244_vm1, %v2435_v17  ;;  %2055 = vmatprep.mubr.msk.f32.mxu0 %vm244_vm1, %v2472_v27 }
  0x61   : > { %2000 = vmatmul.mubr.msk.f32.gmra.mrb[6].mxu1 %vm244_vm1, %v1813_v36  ;;  %2056 = vmatmul.mubr.msk.f32.gmra.mrb[6].mxu0 %vm244_vm1, %v1832_v38 }
 0x120   : > { %v1978_v39 = vpop.f32.mrb[0].mxu1 }
 0x121   : > { %v764_v40 = vpop.f32.mrb[1].mxu1 }
 0x124   : > { %v1981_v41 = vpop.f32.mrb[2].mxu1 }
 0x125   : > { %v774_v42 = vpop.f32.mrb[3].mxu1 }
 0x128   : > { %v2048_v43 = vpop.f32.mrb[0].mxu0 }
 0x129   : > { %v2060_v45 = vadd.f32 %v2048_v43, %v1978_v39  ;;  %v1515_v46 = vpop.f32.mrb[1].mxu0 }
 0x12a   : > { %v2061_v48 = vadd.f32 %v1515_v46, %v764_v40 }
 0x12b   : > { %v1570_v49 = vmul.f32 %v2060_v45, %v1843_v44 }
 0x12c   : > { %v1569_v50 = vmul.f32 %v2061_v48, %v1843_v44  ;;  %v2051_v51 = vpop.f32.mrb[2].mxu0 }
 0x12d   : > { %v1585_v52 = vadd.f32 %v1844_v47, %v1570_v49  ;;  %v2062_v53 = vadd.f32 %v2051_v51, %v1981_v41  ;;  %v1525_v54 = vpop.f32.mrb[3].mxu0 }
 0x12e   : > { %v1584_v55 = vadd.f32 %v1844_v47, %v1569_v50  ;;  %v2063_v56 = vadd.f32 %v1525_v54, %v774_v42 }
 0x12f   : > { %1594 = vst.msk [vmem:[%s2580_s22 + $0x8] sm:$0xff] %vm1592_vm2, %v1585_v52  ;;  %v1572_v57 = vmul.f32 %v2062_v53, %v1843_v44 }
 0x130   : > { %1593 = vst.msk [vmem:[%s2580_s22] sm:$0xff] %vm1592_vm2, %v1584_v55  ;;  %v1571_v58 = vmul.f32 %v2063_v56, %v1843_v44  ;;  %v1998_v59 = vpop.f32.mrb[4].mxu1  ;;  %v2054_v60 = vpop.f32.mrb[4].mxu0 }
 0x131   : > { %v1587_v61 = vadd.f32 %v1844_v47, %v1572_v57  ;;  %v2064_v62 = vadd.f32 %v2054_v60, %v1998_v59  ;;  %v934_v63 = vpop.f32.mrb[5].mxu1  ;;  %v1535_v0 = vpop.f32.mrb[5].mxu0 }
 0x132   : > { %v1586_v1 = vadd.f32 %v1844_v47, %v1571_v58  ;;  %v2065_v2 = vadd.f32 %v1535_v0, %v934_v63 }
 0x133   : > { %1596 = vst.msk [vmem:[%s2580_s22 + $0x18] sm:$0xff] %vm1592_vm2, %v1587_v61  ;;  %v1574_v3 = vmul.f32 %v2064_v62, %v1843_v44 }
 0x134   : > { %1595 = vst.msk [vmem:[%s2580_s22 + $0x10] sm:$0xff] %vm1592_vm2, %v1586_v1  ;;  %v1573_v4 = vmul.f32 %v2065_v2, %v1843_v44  ;;  %v2001_v5 = vpop.f32.mrb[6].mxu1  ;;  %v2057_v6 = vpop.f32.mrb[6].mxu0 }
 0x135   : > { %v1589_v7 = vadd.f32 %v1844_v47, %v1574_v3  ;;  %v2066_v8 = vadd.f32 %v2057_v6, %v2001_v5  ;;  %v944_v9 = vpop.f32.mrb[7].mxu1  ;;  %v1545_v10 = vpop.f32.mrb[7].mxu0 }
 0x136   : > { %v1588_v11 = vadd.f32 %v1844_v47, %v1573_v4  ;;  %v2067_v12 = vadd.f32 %v1545_v10, %v944_v9 }
 0x137   : > { %1598 = vst.msk [vmem:[%s2580_s22 + $0x28] sm:$0xff] %vm1592_vm2, %v1589_v7  ;;  %v1576_v13 = vmul.f32 %v2066_v8, %v1843_v44 }
 0x138   : > { %1597 = vst.msk [vmem:[%s2580_s22 + $0x20] sm:$0xff] %vm1592_vm2, %v1588_v11  ;;  %v1575_v14 = vmul.f32 %v2067_v12, %v1843_v44 }
 0x139   : > { %v1591_v15 = vadd.f32 %v1844_v47, %v1576_v13 }
 0x13a   : > { %v1590_v16 = vadd.f32 %v1844_v47, %v1575_v14 }
 0x13b   : > { %1600 = vst.msk [vmem:[%s2580_s22 + $0x38] sm:$0xff] %vm1592_vm2, %v1591_v15 }
 0x13c   : > { %1599 = vst.msk [vmem:[%s2580_s22 + $0x30] sm:$0xff] %vm1592_vm2, %v1590_v16 }
 0x13d   : > { %2195 = shalt.err (!%p2192_p5)
}
 0x13e   : > { %s2196_s10 = scalar_lea.hbm %s2599_s5, 1024  ;;  %s2200_s13 = scalar_lea.hbm %s2659_s4, 2048 }
 0x13f   : > { %p2197_p6 = scmp.ne.s32.totalorder %s2599_s5, %s2196_s10  ;;  %p2201_p10 = scmp.lt.u32.totalorder %s2599_s5, %s2659_s4 }
 0x140   : > { %p2202_p11 = scmp.lt.u32.totalorder %s2200_s13, %s2196_s10  ;;  %p2204_p13 = scmp.lt.u32.totalorder %s2196_s10, %s2599_s5 }
 0x141   : > { %p2198_p7 = pnand %p2197_p6, %p2330_p4 }
 0x142   : > { %p2203_p12 = por %p2202_p11, %p2201_p10 }
 0x143   : > { %p2199_p9 = pneg %p2198_p7 }
 0x144   : > { %p2205_p0 = por %p2204_p13, %p2203_p12 }
 0x146   : > { %p2206_p1 = pnand %p2205_p0, %p2199_p9 }
 0x148   : > { %2209 = shalt.err (!%p2206_p1)
}
 0x149   : > { %s2263_s22 = smov 128   ;;  %s2264_s24 = smov 8  }
 0x14a   : > { %2125 = dma.vmem_to_hbm [thread:$0]  (%p2330_p4), %s2601_s26, 1024, %s2599_s5, %s2609_s18, %s2263_s22, %s2263_s22, %s2264_s24  }
 0x14b PF: > { %p2131_p2 = scmp.ge.s32.totalorder %s2260_s20, 2  ;;  %s1632_s29 = sand.u32 1, %s2240_s15  }
 0x14c   : > { %s1633_s30 = scalar_lea.sflag [#allocation3], %s1632_s29 }
 0x14d   : > { %p2128_p3 = pnand %p2131_p2, %p2337_p8 }
 0x14f   : > { %2235 = dma.done.wait (!%p2128_p3), %s1633_s30, 1024  }
 0x150   : > { %2237 = vsyncadd (!%p2128_p3), %s1633_s30, 4294966272  ;;  %s17_s20 = sadd.s32 1, %s2260_s20   ;;  %s2662_s15 = smov %s2244_s16 }
 0x151   : > { %p14_p5 = scmp.ge.s32.totalorder %s17_s20, 4   ;;  %s2663_s16 = smov %s2248_s17 }
 0x152   : > { %s2664_s17 = smov %s2343_s28  ;;  %s2665_s18 = smov %s2256_s19 }
 0x153   : > { %s2666_s19 = smov %s2668_s23  ;;  %16 = sbr.rel (!%p14_p5) target bundleno = 4 (0x4), region = 81 }
 0x15a   :  { %1638 = vsyncpa [#allocation3], 1 }
 0x15b   :  { %1640 = vsyncpa [#allocation3 + $0x1], 1 }

</bundles_post_ra>
